<compile_context>
chip_gen: v5e
topology: v5e:2x2
jax: 0.10.0
libtpu: 0.0.40
codegen_flags: <defaults>
</compile_context>

<pallas_src>
import jax
import jax.numpy as jnp
from jax.experimental import pallas as pl
from jax.experimental.pallas import tpu as pltpu


def _round_up(n, m):
    return ((n + m - 1) // m) * m


def moe_kernel(x_ref, wg_ref, bg_ref, we_ref, be_ref, o_ref):
    """One batch tile of the sparse-MoE forward (top_k=1).

    x_ref : [TB, Din]            input tile (f32, pipelined over batch)
    wg_ref: [Din, E]             gate weight, transposed (f32 -> exact routing)
    bg_ref: [1, E]               gate bias (f32)
    we_ref: [Din, E*Dout_pad]    fused, transposed expert weights (bf16)
    be_ref: [E, Dout_pad]        expert bias matrix (f32, one row per expert)
    o_ref : [TB, Dout_pad]       output tile (lane-dense: Dout_pad % 128 == 0)
    """
    x = x_ref[...]                                        # [TB, Din] f32
    tb = x.shape[0]
    num_experts = wg_ref.shape[1]
    dout_p = o_ref.shape[1]

    # --- gating: logits only (softmax elided; argmax is invariant under it) ---
    logits = jnp.dot(x, wg_ref[...],
                     preferred_element_type=jnp.float32) + bg_ref[...]   # [TB, E]

    # first-occurrence argmax (matches torch.argmax / jnp.argmax tie behavior)
    eidx = jax.lax.broadcasted_iota(jnp.int32, logits.shape, 1)          # [TB, E]
    lmax = jnp.max(logits, axis=-1, keepdims=True)
    top_idx = jnp.min(jnp.where(logits >= lmax, eidx, num_experts),
                      axis=-1, keepdims=True)                            # [TB, 1]

    # --- single fused, lane-dense expert GEMM (bf16 in, f32 accumulate) -------
    # No full-width bias add here: the selected bias is added below via MXU.
    y = jnp.dot(x.astype(jnp.bfloat16), we_ref[...],
                preferred_element_type=jnp.float32)                      # [TB, E*Dout_pad]

    # --- one-hot select: where-chain over lane-aligned slices (no 0*inf NaN) --
    acc = jnp.zeros((tb, dout_p), jnp.float32)
    for e in range(num_experts):                          # static, tiny E
        acc = jnp.where(top_idx == e, y[:, e * dout_p:(e + 1) * dout_p], acc)

    # --- selected expert bias via one-hot MXU matmul (frees the VPU slot) -----
    onehot = (top_idx == eidx).astype(jnp.float32)                       # [TB, E]
    sel_bias = jnp.dot(onehot, be_ref[...],
                       preferred_element_type=jnp.float32)               # [TB, Dout_pad]

    o_ref[...] = (acc + sel_bias).astype(o_ref.dtype)


def pack_moe_params(wg_t, bg, we_t, be, *, expert_dtype=jnp.bfloat16):
    """One-time packing (hoisted out of the per-call forward).

    wg_t:[Din,E], bg:[1,E], we_t:[E,Din,Dout], be:[E,Dout]
    Returns (wg_f32, bg_f32, we_fused, be_mat, Dout).
    """
    din, num_e = wg_t.shape
    e2, din2, dout = we_t.shape
    assert e2 == num_e and din2 == din and be.shape == (num_e, dout)

    dout_p = _round_up(dout, 128)                         # lane-dense output
    we_p = jnp.pad(we_t, ((0, 0), (0, 0), (0, dout_p - dout)))
    we_fused = jnp.transpose(we_p, (1, 0, 2)).reshape(din, num_e * dout_p)
    we_fused = we_fused.astype(expert_dtype)              # bf16 weights
    be_mat = jnp.pad(be, ((0, 0), (0, dout_p - dout))).astype(jnp.float32)  # [E, Dout_pad]
    wg_f32 = wg_t.astype(jnp.float32)                     # gate stays f32: exact routing
    bg_f32 = bg.reshape(1, num_e).astype(jnp.float32)
    return wg_f32, bg_f32, we_fused, be_mat, dout


def _vmem_bytes(tile_b, din, num_e, dout_p, expert_itemsize, weight_bufs=2):
    """Per-step VMEM footprint estimate (conservative: double-buffered weights)."""
    x_bytes = 2 * tile_b * din * 4                        # double-buffered input tile
    out_bytes = 2 * tile_b * dout_p * 4                   # double-buffered output tile
    w_bytes = weight_bufs * (din * num_e * 4 + num_e * 4
                             + din * num_e * dout_p * expert_itemsize
                             + num_e * dout_p * 4)
    y_bytes = tile_b * num_e * dout_p * 4                 # fused GEMM intermediate
    return x_bytes + out_bytes + w_bytes + y_bytes


def sparse_moe_forward(x, packed_params, *, tile_b=256):
    """x:[B,Din] f32; packed_params from pack_moe_params()."""
    wg_f32, bg_f32, we_fused, be_mat, dout = packed_params
    B, din = x.shape
    num_e = wg_f32.shape[1]
    dout_p = be_mat.shape[1]
    expert_itemsize = jnp.dtype(we_fused.dtype).itemsize
    assert wg_f32.shape == (din, num_e)
    assert we_fused.shape == (din, num_e * dout_p)

    # Chip VMEM budget (v7x: 64 MiB, v5e/v6e: 128 MiB); leave margin.
    try:
        vmem_cap = int(pltpu.get_tpu_info().vmem_capacity_bytes)
    except Exception:
        vmem_cap = 64 * 1024 * 1024
    budget = vmem_cap - (4 << 20)

    # Large batch tiles (multiple of 8); shrink if footprint would overflow.
    tile_b = max(8, min(_round_up(tile_b, 8), _round_up(B, 8)))
    while tile_b > 8 and _vmem_bytes(tile_b, din, num_e, dout_p, expert_itemsize) > budget:
        tile_b = max(8, _round_up(tile_b // 2, 8))
    # TODO(synk): if even tile_b=8 does not fit (production-size experts), the
    #             fused weight must be streamed over a grid axis (header TODO).

    b_pad = _round_up(B, tile_b)
    xp = jnp.pad(x, ((0, b_pad - B), (0, 0))) if b_pad != B else x
    grid = (b_pad // tile_b,)

    est = _vmem_bytes(tile_b, din, num_e, dout_p, expert_itemsize)
    vmem_limit = int(max(32 * 1024 * 1024, min(2 * est, budget)))

    flops = int(2 * b_pad * din * num_e                   # gate GEMM
                + 2 * b_pad * din * (num_e * dout_p)      # fused expert GEMM
                + 2 * b_pad * num_e * dout_p)             # one-hot bias GEMM
    bytes_accessed = int(xp.size * 4 + wg_f32.size * 4 + bg_f32.size * 4
                         + we_fused.size * expert_itemsize + be_mat.size * 4
                         + b_pad * dout_p * 4)

    def make_call(single_buffer_weights):
        const_kwargs = ({"pipeline_mode": pl.Buffered(1)}
                        if single_buffer_weights else {})

        def const_spec(shape):
            # Constant block index -> resident weights; single-buffer them.
            return pl.BlockSpec(shape, lambda i: (0, 0), **const_kwargs)

        in_specs = [
            pl.BlockSpec((tile_b, din), lambda i: (i, 0)),        # x tile (pipelined)
            const_spec((din, num_e)),                             # gate W^T
            const_spec((1, num_e)),                               # gate bias
            const_spec((din, num_e * dout_p)),                    # fused expert W^T
            const_spec((num_e, dout_p)),                          # expert bias matrix
        ]
        return pl.pallas_call(
            moe_kernel,
            out_shape=jax.ShapeDtypeStruct((b_pad, dout_p), x.dtype),
            grid_spec=pltpu.PrefetchScalarGridSpec(
                num_scalar_prefetch=0,
                grid=grid,
                in_specs=in_specs,
                out_specs=pl.BlockSpec((tile_b, dout_p), lambda i: (i, 0)),
            ),
            compiler_params=pltpu.CompilerParams(
                # TODO(synk): pltpu.CORE_PARALLEL on v7x once grid >= num cores
                #             (grid is 1 at these toy shapes).
                dimension_semantics=(pltpu.PARALLEL,),
                vmem_limit_bytes=vmem_limit,
            ),
            cost_estimate=pl.CostEstimate(flops=flops, transcendentals=0,
                                          bytes_accessed=bytes_accessed),
        )

    try:
        out = make_call(True)(xp, wg_f32, bg_f32, we_fused, be_mat)
    except Exception:
        # pl.Buffered(1) not supported on the outer pipeline in this jax build;
        # fall back to default double buffering (correct, slightly more VMEM).
        out = make_call(False)(xp, wg_f32, bg_f32, we_fused, be_mat)

    return out[:B, :dout]


def sparse_moe_reference(x, wg_t, bg, we_t, be):
    """Pure-JAX f32 reference mirroring the PyTorch forward (top_k=1)."""
    hp = jax.lax.Precision.HIGHEST
    logits = jnp.dot(x, wg_t, precision=hp) + bg                            # [B, E]
    probs = jax.nn.softmax(logits, axis=-1)
    top = jnp.argmax(probs, axis=-1)                                        # [B]
    expert_outs = jnp.einsum("bd,edo->beo", x, we_t, precision=hp) + be[None]  # [B,E,Dout]
    return expert_outs[jnp.arange(x.shape[0]), top]


if __name__ == "__main__":
    # Small shapes consistent with the module: batch=16, input_dim=32,
    # output_dim=32, num_experts=4, top_k=1 (default).
    B, Din, Dout, E = 16, 32, 32, 4

    key = jax.random.PRNGKey(0)
    kx, kwg, kbg, kwe, kbe = jax.random.split(key, 5)

    x = jax.random.normal(kx, (B, Din), dtype=jnp.float32)

    # Deterministic nn.Linear-like init (uniform, 1/sqrt(fan_in) scale).
    scale = 1.0 / jnp.sqrt(jnp.float32(Din))
    wg_t = jax.random.uniform(kwg, (Din, E), jnp.float32, -1.0, 1.0) * scale
    bg = jax.random.uniform(kbg, (1, E), jnp.float32, -1.0, 1.0) * scale
    we_t = jax.random.uniform(kwe, (E, Din, Dout), jnp.float32, -1.0, 1.0) * scale
    be = jax.random.uniform(kbe, (E, Dout), jnp.float32, -1.0, 1.0) * scale

    # One-time weight packing (hoisted out of the forward).
    packed = pack_moe_params(wg_t, bg, we_t, be)

    out = sparse_moe_forward(x, packed)
    out = jax.block_until_ready(out)

    ref = sparse_moe_reference(x, wg_t, bg, we_t, be)
    assert out.shape == (B, Dout)
    # Expert GEMM runs in bf16 (f32 accumulate) vs the f32 reference, so use a
    # bf16-level tolerance; routing itself is computed in f32 and matches exactly.
    assert jnp.allclose(out, ref, atol=3e-2, rtol=3e-2), "mismatch vs reference"

    print("KERNEL_OK")
</pallas_src>

<mosaic_0001>
module attributes {stable_mosaic.version = 11 : i64} {
  func.func @moe_kernel(%arg0: i32, %arg1: memref<16x32xf32, #tpu.memory_space<vmem>>, %arg2: memref<32x4xf32, #tpu.memory_space<vmem>>, %arg3: memref<1x4xf32, #tpu.memory_space<vmem>>, %arg4: memref<32x512xbf16, #tpu.memory_space<vmem>>, %arg5: memref<4x128xf32, #tpu.memory_space<vmem>>, %arg6: memref<16x128xf32, #tpu.memory_space<vmem>>) attributes {dimension_semantics = [#tpu.dimension_semantics<parallel>], iteration_bounds = array<i64: 1>, scalar_prefetch = 0 : i64, scratch_operands = 0 : i64, tpu.core_type = #tpu.core_type<tc>, window_params = [{transform_indices = @transform_0, window_bounds = array<i64: 16, 32>}, {pipeline_mode = #tpu.pipeline_mode<synchronous>, transform_indices = @transform_1, window_bounds = array<i64: 32, 4>}, {pipeline_mode = #tpu.pipeline_mode<synchronous>, transform_indices = @transform_2, window_bounds = array<i64: 1, 4>}, {pipeline_mode = #tpu.pipeline_mode<synchronous>, transform_indices = @transform_3, window_bounds = array<i64: 32, 512>}, {pipeline_mode = #tpu.pipeline_mode<synchronous>, transform_indices = @transform_4, window_bounds = array<i64: 4, 128>}, {transform_indices = @transform_5, window_bounds = array<i64: 16, 128>}]} {
    %c0 = arith.constant 0 : index
    %c0_0 = arith.constant 0 : index
    %0 = vector.load %arg1[%c0, %c0_0] : memref<16x32xf32, #tpu.memory_space<vmem>>, vector<16x32xf32>
    %c0_1 = arith.constant 0 : index
    %c0_2 = arith.constant 0 : index
    %1 = vector.load %arg2[%c0_1, %c0_2] : memref<32x4xf32, #tpu.memory_space<vmem>>, vector<32x4xf32>
    %cst = arith.constant dense<0.000000e+00> : vector<16x4xf32>
    %2 = tpu.matmul %0, %1, %cst {dimension_numbers = #tpu.dot_dimension_numbers<[1], [0], [0], [1], [0, 0, 1, 1], [], []>} : vector<16x32xf32>, vector<32x4xf32>, vector<16x4xf32> -> vector<16x4xf32>
    %c0_3 = arith.constant 0 : index
    %c0_4 = arith.constant 0 : index
    %3 = vector.load %arg3[%c0_3, %c0_4] : memref<1x4xf32, #tpu.memory_space<vmem>>, vector<1x4xf32>
    %4 = vector.broadcast %3 : vector<1x4xf32> to vector<16x4xf32>
    %5 = arith.addf %2, %4 : vector<16x4xf32>
    %6 = tpu.iota {dimensions = array<i32: 1>} : vector<16x4xi32>
    %cst_5 = arith.constant dense<0xFF800000> : vector<16xf32>
    %7 = vector.multi_reduction <maximumf>, %5, %cst_5 [1] : vector<16x4xf32> to vector<16xf32>
    %8 = vector.shape_cast %7 : vector<16xf32> to vector<16x1xf32>
    %9 = vector.broadcast %8 : vector<16x1xf32> to vector<16x4xf32>
    %10 = arith.cmpf oge, %5, %9 : vector<16x4xf32>
    %c4_i32 = arith.constant 4 : i32
    %11 = vector.broadcast %c4_i32 : i32 to vector<16x4xi32>
    %12 = arith.select %10, %6, %11 : vector<16x4xi1>, vector<16x4xi32>
    %cst_6 = arith.constant dense<2147483647> : vector<16xi32>
    %13 = vector.multi_reduction <minsi>, %12, %cst_6 [1] : vector<16x4xi32> to vector<16xi32>
    %14 = vector.shape_cast %13 : vector<16xi32> to vector<16x1xi32>
    %15 = arith.truncf %0 : vector<16x32xf32> to vector<16x32xbf16>
    %c0_7 = arith.constant 0 : index
    %c0_8 = arith.constant 0 : index
    %16 = vector.load %arg4[%c0_7, %c0_8] : memref<32x512xbf16, #tpu.memory_space<vmem>>, vector<32x512xbf16>
    %cst_9 = arith.constant dense<0.000000e+00> : vector<16x512xf32>
    %17 = tpu.matmul %15, %16, %cst_9 {dimension_numbers = #tpu.dot_dimension_numbers<[1], [0], [0], [1], [0, 0, 1, 1], [], []>} : vector<16x32xbf16>, vector<32x512xbf16>, vector<16x512xf32> -> vector<16x512xf32>
    %cst_10 = arith.constant 0.000000e+00 : f32
    %18 = vector.broadcast %cst_10 : f32 to vector<16x128xf32>
    %c0_i32 = arith.constant 0 : i32
    %19 = vector.broadcast %c0_i32 : i32 to vector<16x1xi32>
    %20 = arith.cmpi eq, %14, %19 : vector<16x1xi32>
    %21 = vector.extract_strided_slice %17 {offsets = [0, 0], sizes = [16, 128], strides = [1, 1]} : vector<16x512xf32> to vector<16x128xf32>
    %22 = vector.shape_cast %20 : vector<16x1xi1> to vector<16x1xi1>
    %23 = vector.broadcast %22 : vector<16x1xi1> to vector<16x128xi1>
    %24 = arith.select %23, %21, %18 : vector<16x128xi1>, vector<16x128xf32>
    %c1_i32 = arith.constant 1 : i32
    %25 = vector.broadcast %c1_i32 : i32 to vector<16x1xi32>
    %26 = arith.cmpi eq, %14, %25 : vector<16x1xi32>
    %27 = vector.extract_strided_slice %17 {offsets = [0, 128], sizes = [16, 128], strides = [1, 1]} : vector<16x512xf32> to vector<16x128xf32>
    %28 = vector.shape_cast %26 : vector<16x1xi1> to vector<16x1xi1>
    %29 = vector.broadcast %28 : vector<16x1xi1> to vector<16x128xi1>
    %30 = arith.select %29, %27, %24 : vector<16x128xi1>, vector<16x128xf32>
    %c2_i32 = arith.constant 2 : i32
    %31 = vector.broadcast %c2_i32 : i32 to vector<16x1xi32>
    %32 = arith.cmpi eq, %14, %31 : vector<16x1xi32>
    %33 = vector.extract_strided_slice %17 {offsets = [0, 256], sizes = [16, 128], strides = [1, 1]} : vector<16x512xf32> to vector<16x128xf32>
    %34 = vector.shape_cast %32 : vector<16x1xi1> to vector<16x1xi1>
    %35 = vector.broadcast %34 : vector<16x1xi1> to vector<16x128xi1>
    %36 = arith.select %35, %33, %30 : vector<16x128xi1>, vector<16x128xf32>
    %c3_i32 = arith.constant 3 : i32
    %37 = vector.broadcast %c3_i32 : i32 to vector<16x1xi32>
    %38 = arith.cmpi eq, %14, %37 : vector<16x1xi32>
    %39 = vector.extract_strided_slice %17 {offsets = [0, 384], sizes = [16, 128], strides = [1, 1]} : vector<16x512xf32> to vector<16x128xf32>
    %40 = vector.shape_cast %38 : vector<16x1xi1> to vector<16x1xi1>
    %41 = vector.broadcast %40 : vector<16x1xi1> to vector<16x128xi1>
    %42 = arith.select %41, %39, %36 : vector<16x128xi1>, vector<16x128xf32>
    %43 = vector.broadcast %14 : vector<16x1xi32> to vector<16x4xi32>
    %44 = arith.cmpi eq, %43, %6 : vector<16x4xi32>
    %45 = arith.extui %44 : vector<16x4xi1> to vector<16x4xi32>
    %46 = arith.sitofp %45 : vector<16x4xi32> to vector<16x4xf32>
    %c0_11 = arith.constant 0 : index
    %c0_12 = arith.constant 0 : index
    %47 = vector.load %arg5[%c0_11, %c0_12] : memref<4x128xf32, #tpu.memory_space<vmem>>, vector<4x128xf32>
    %cst_13 = arith.constant dense<0.000000e+00> : vector<16x128xf32>
    %48 = tpu.matmul %46, %47, %cst_13 {dimension_numbers = #tpu.dot_dimension_numbers<[1], [0], [0], [1], [0, 0, 1, 1], [], []>} : vector<16x4xf32>, vector<4x128xf32>, vector<16x128xf32> -> vector<16x128xf32>
    %49 = arith.addf %42, %48 : vector<16x128xf32>
    %c0_14 = arith.constant 0 : index
    %c0_15 = arith.constant 0 : index
    %50 = vector.load %arg6[%c0_14, %c0_15] : memref<16x128xf32, #tpu.memory_space<vmem>>, vector<16x128xf32>
    tpu.vector_store %arg6[%c0_14, %c0_15], %49 {strides = array<i32>} : memref<16x128xf32, #tpu.memory_space<vmem>>, vector<16x128xf32>,
    return
  }
  func.func @transform_0(%arg0: i32) -> (i32, i32) {
    %c0_i32 = arith.constant 0 : i32
    %c0_i32_0 = arith.constant 0 : i32
    return %arg0, %c0_i32 : i32, i32
  }
  func.func @transform_1(%arg0: i32) -> (i32, i32) {
    %c0_i32 = arith.constant 0 : i32
    %c0_i32_0 = arith.constant 0 : i32
    %c0_i32_1 = arith.constant 0 : i32
    return %c0_i32, %c0_i32_0 : i32, i32
  }
  func.func @transform_2(%arg0: i32) -> (i32, i32) {
    %c0_i32 = arith.constant 0 : i32
    %c0_i32_0 = arith.constant 0 : i32
    %c0_i32_1 = arith.constant 0 : i32
    return %c0_i32, %c0_i32_0 : i32, i32
  }
  func.func @transform_3(%arg0: i32) -> (i32, i32) {
    %c0_i32 = arith.constant 0 : i32
    %c0_i32_0 = arith.constant 0 : i32
    %c0_i32_1 = arith.constant 0 : i32
    return %c0_i32, %c0_i32_0 : i32, i32
  }
  func.func @transform_4(%arg0: i32) -> (i32, i32) {
    %c0_i32 = arith.constant 0 : i32
    %c0_i32_0 = arith.constant 0 : i32
    %c0_i32_1 = arith.constant 0 : i32
    return %c0_i32, %c0_i32_0 : i32, i32
  }
  func.func @transform_5(%arg0: i32) -> (i32, i32) {
    %c0_i32 = arith.constant 0 : i32
    %c0_i32_0 = arith.constant 0 : i32
    return %arg0, %c0_i32 : i32, i32
  }
}

module attributes {stable_mosaic.version = 11 : i64} {
  func.func @moe_kernel(%arg0: i32, %arg1: memref<16x32xf32, #tpu.memory_space<vmem>>, %arg2: memref<32x4xf32, #tpu.memory_space<vmem>>, %arg3: memref<1x4xf32, #tpu.memory_space<vmem>>, %arg4: memref<32x512xbf16, #tpu.memory_space<vmem>>, %arg5: memref<4x128xf32, #tpu.memory_space<vmem>>, %arg6: memref<16x128xf32, #tpu.memory_space<vmem>>) attributes {dimension_semantics = [#tpu.dimension_semantics<parallel>], iteration_bounds = array<i64: 1>, scalar_prefetch = 0 : i64, scratch_operands = 0 : i64, tpu.core_type = #tpu.core_type<tc>, window_params = [{transform_indices = @transform_0, window_bounds = array<i64: 16, 32>}, {pipeline_mode = #tpu.pipeline_mode<synchronous>, transform_indices = @transform_1, window_bounds = array<i64: 32, 4>}, {pipeline_mode = #tpu.pipeline_mode<synchronous>, transform_indices = @transform_2, window_bounds = array<i64: 1, 4>}, {pipeline_mode = #tpu.pipeline_mode<synchronous>, transform_indices = @transform_3, window_bounds = array<i64: 32, 512>}, {pipeline_mode = #tpu.pipeline_mode<synchronous>, transform_indices = @transform_4, window_bounds = array<i64: 4, 128>}, {transform_indices = @transform_5, window_bounds = array<i64: 16, 128>}]} {
    %c0 = arith.constant 0 : index
    %c0_0 = arith.constant 0 : index
    %0 = vector.load %arg1[%c0, %c0_0] : memref<16x32xf32, #tpu.memory_space<vmem>>, vector<16x32xf32>
    %c0_1 = arith.constant 0 : index
    %c0_2 = arith.constant 0 : index
    %1 = vector.load %arg2[%c0_1, %c0_2] : memref<32x4xf32, #tpu.memory_space<vmem>>, vector<32x4xf32>
    %cst = arith.constant dense<0.000000e+00> : vector<16x4xf32>
    %2 = tpu.matmul %0, %1, %cst {dimension_numbers = #tpu.dot_dimension_numbers<[1], [0], [0], [1], [0, 0, 1, 1], [], []>} : vector<16x32xf32>, vector<32x4xf32>, vector<16x4xf32> -> vector<16x4xf32>
    %c0_3 = arith.constant 0 : index
    %c0_4 = arith.constant 0 : index
    %3 = vector.load %arg3[%c0_3, %c0_4] : memref<1x4xf32, #tpu.memory_space<vmem>>, vector<1x4xf32>
    %4 = vector.broadcast %3 : vector<1x4xf32> to vector<16x4xf32>
    %5 = arith.addf %2, %4 : vector<16x4xf32>
    %6 = tpu.iota {dimensions = array<i32: 1>} : vector<16x4xi32>
    %cst_5 = arith.constant dense<0xFF800000> : vector<16xf32>
    %7 = vector.multi_reduction <maximumf>, %5, %cst_5 [1] : vector<16x4xf32> to vector<16xf32>
    %8 = vector.shape_cast %7 : vector<16xf32> to vector<16x1xf32>
    %9 = vector.broadcast %8 : vector<16x1xf32> to vector<16x4xf32>
    %10 = arith.cmpf oge, %5, %9 : vector<16x4xf32>
    %c4_i32 = arith.constant 4 : i32
    %11 = vector.broadcast %c4_i32 : i32 to vector<16x4xi32>
    %12 = arith.select %10, %6, %11 : vector<16x4xi1>, vector<16x4xi32>
    %cst_6 = arith.constant dense<2147483647> : vector<16xi32>
    %13 = vector.multi_reduction <minsi>, %12, %cst_6 [1] : vector<16x4xi32> to vector<16xi32>
    %14 = vector.shape_cast %13 : vector<16xi32> to vector<16x1xi32>
    %15 = arith.truncf %0 : vector<16x32xf32> to vector<16x32xbf16>
    %c0_7 = arith.constant 0 : index
    %c0_8 = arith.constant 0 : index
    %16 = vector.load %arg4[%c0_7, %c0_8] : memref<32x512xbf16, #tpu.memory_space<vmem>>, vector<32x512xbf16>
    %cst_9 = arith.constant dense<0.000000e+00> : vector<16x512xf32>
    %17 = tpu.matmul %15, %16, %cst_9 {dimension_numbers = #tpu.dot_dimension_numbers<[1], [0], [0], [1], [0, 0, 1, 1], [], []>} : vector<16x32xbf16>, vector<32x512xbf16>, vector<16x512xf32> -> vector<16x512xf32>
    %cst_10 = arith.constant 0.000000e+00 : f32
    %18 = vector.broadcast %cst_10 : f32 to vector<16x128xf32>
    %c0_i32 = arith.constant 0 : i32
    %19 = vector.broadcast %c0_i32 : i32 to vector<16x1xi32>
    %20 = arith.cmpi eq, %14, %19 : vector<16x1xi32>
    %21 = vector.extract_strided_slice %17 {offsets = [0, 0], sizes = [16, 128], strides = [1, 1]} : vector<16x512xf32> to vector<16x128xf32>
    %22 = vector.shape_cast %20 : vector<16x1xi1> to vector<16x1xi1>
    %23 = vector.broadcast %22 : vector<16x1xi1> to vector<16x128xi1>
    %24 = arith.select %23, %21, %18 : vector<16x128xi1>, vector<16x128xf32>
    %c1_i32 = arith.constant 1 : i32
    %25 = vector.broadcast %c1_i32 : i32 to vector<16x1xi32>
    %26 = arith.cmpi eq, %14, %25 : vector<16x1xi32>
    %27 = vector.extract_strided_slice %17 {offsets = [0, 128], sizes = [16, 128], strides = [1, 1]} : vector<16x512xf32> to vector<16x128xf32>
    %28 = vector.shape_cast %26 : vector<16x1xi1> to vector<16x1xi1>
    %29 = vector.broadcast %28 : vector<16x1xi1> to vector<16x128xi1>
    %30 = arith.select %29, %27, %24 : vector<16x128xi1>, vector<16x128xf32>
    %c2_i32 = arith.constant 2 : i32
    %31 = vector.broadcast %c2_i32 : i32 to vector<16x1xi32>
    %32 = arith.cmpi eq, %14, %31 : vector<16x1xi32>
    %33 = vector.extract_strided_slice %17 {offsets = [0, 256], sizes = [16, 128], strides = [1, 1]} : vector<16x512xf32> to vector<16x128xf32>
    %34 = vector.shape_cast %32 : vector<16x1xi1> to vector<16x1xi1>
    %35 = vector.broadcast %34 : vector<16x1xi1> to vector<16x128xi1>
    %36 = arith.select %35, %33, %30 : vector<16x128xi1>, vector<16x128xf32>
    %c3_i32 = arith.constant 3 : i32
    %37 = vector.broadcast %c3_i32 : i32 to vector<16x1xi32>
    %38 = arith.cmpi eq, %14, %37 : vector<16x1xi32>
    %39 = vector.extract_strided_slice %17 {offsets = [0, 384], sizes = [16, 128], strides = [1, 1]} : vector<16x512xf32> to vector<16x128xf32>
    %40 = vector.shape_cast %38 : vector<16x1xi1> to vector<16x1xi1>
    %41 = vector.broadcast %40 : vector<16x1xi1> to vector<16x128xi1>
    %42 = arith.select %41, %39, %36 : vector<16x128xi1>, vector<16x128xf32>
    %43 = vector.broadcast %14 : vector<16x1xi32> to vector<16x4xi32>
    %44 = arith.cmpi eq, %43, %6 : vector<16x4xi32>
    %45 = arith.extui %44 : vector<16x4xi1> to vector<16x4xi32>
    %46 = arith.sitofp %45 : vector<16x4xi32> to vector<16x4xf32>
    %c0_11 = arith.constant 0 : index
    %c0_12 = arith.constant 0 : index
    %47 = vector.load %arg5[%c0_11, %c0_12] : memref<4x128xf32, #tpu.memory_space<vmem>>, vector<4x128xf32>
    %cst_13 = arith.constant dense<0.000000e+00> : vector<16x128xf32>
    %48 = tpu.matmul %46, %47, %cst_13 {dimension_numbers = #tpu.dot_dimension_numbers<[1], [0], [0], [1], [0, 0, 1, 1], [], []>} : vector<16x4xf32>, vector<4x128xf32>, vector<16x128xf32> -> vector<16x128xf32>
    %49 = arith.addf %42, %48 : vector<16x128xf32>
    %c0_14 = arith.constant 0 : index
    %c0_15 = arith.constant 0 : index
    %50 = vector.load %arg6[%c0_14, %c0_15] : memref<16x128xf32, #tpu.memory_space<vmem>>, vector<16x128xf32>
    tpu.vector_store %arg6[%c0_14, %c0_15], %49 {strides = array<i32>} : memref<16x128xf32, #tpu.memory_space<vmem>>, vector<16x128xf32>,
    return
  }
  func.func @transform_0(%arg0: i32) -> (i32, i32) {
    %c0_i32 = arith.constant 0 : i32
    %c0_i32_0 = arith.constant 0 : i32
    return %arg0, %c0_i32 : i32, i32
  }
  func.func @transform_1(%arg0: i32) -> (i32, i32) {
    %c0_i32 = arith.constant 0 : i32
    %c0_i32_0 = arith.constant 0 : i32
    %c0_i32_1 = arith.constant 0 : i32
    return %c0_i32, %c0_i32_0 : i32, i32
  }
  func.func @transform_2(%arg0: i32) -> (i32, i32) {
    %c0_i32 = arith.constant 0 : i32
    %c0_i32_0 = arith.constant 0 : i32
    %c0_i32_1 = arith.constant 0 : i32
    return %c0_i32, %c0_i32_0 : i32, i32
  }
  func.func @transform_3(%arg0: i32) -> (i32, i32) {
    %c0_i32 = arith.constant 0 : i32
    %c0_i32_0 = arith.constant 0 : i32
    %c0_i32_1 = arith.constant 0 : i32
    return %c0_i32, %c0_i32_0 : i32, i32
  }
  func.func @transform_4(%arg0: i32) -> (i32, i32) {
    %c0_i32 = arith.constant 0 : i32
    %c0_i32_0 = arith.constant 0 : i32
    %c0_i32_1 = arith.constant 0 : i32
    return %c0_i32, %c0_i32_0 : i32, i32
  }
  func.func @transform_5(%arg0: i32) -> (i32, i32) {
    %c0_i32 = arith.constant 0 : i32
    %c0_i32_0 = arith.constant 0 : i32
    return %arg0, %c0_i32 : i32, i32
  }
}

</mosaic_0001>

<bundles_post_ra>
// kernel: tpu_custom_call.1
= control target key start
LH: loop header
LB: loop body
LE: loop exit
PB: predicated region body
PF: predicated region fallthrough
CT: control target
= control target key end

     0   :  { %10 = vsyncpa [#allocation3], 0  ;;  %s519_s0 = inlined_call_operand.vmem [shape: f32[16,32], index: 0, kind: input, shape index: {}]   ;;  %s520_s1 = inlined_call_operand.vmem [shape: f32[32,4], index: 1, kind: input, shape index: {}]   ;;  %s521_s2 = inlined_call_operand.vmem [shape: f32[1,4], index: 2, kind: input, shape index: {}]   ;;  %s522_s3 = inlined_call_operand.hbm [shape: bf16[32,512], index: 3, kind: input, shape index: {}]   ;;  %s523_s4 = inlined_call_operand.vmem [shape: f32[4,128], index: 4, kind: input, shape index: {}]   ;;  %s524_s5 = inlined_call_operand.hbm [shape: f32[16,128], index: 5, kind: output, shape index: {}]  }
   0x1   :  { %11 = vsyncpa [#allocation4], 0  ;;  %s22_s20 = sshll.u32 %s522_s3, 4  ;;  %s440_s21 = smov [#allocation2]   ;;  %s23_s20 = int_to_ptr.hbm [resolvable:$true] %s22_s20 }
   0x2   :  { %s24_s22 = sshll.u32 %s440_s21, 4  ;;  %s441_s23 = smov 256   ;;  %s25_s22 = int_to_ptr.vmem [resolvable:$true] %s24_s22 }
   0x3   :  { %s442_s24 = smov 16  }
   0x4   :  { %30 = dma.hbm_to_vmem [thread:$0]  %s23_s20, 1024, %s25_s22, [#allocation3], %s441_s23, %s441_s23, %s442_s24  }
   0x5   :  { %436 = dma.done.wait [#allocation3], 1024  }
   0x6   :  { %437 = vsyncadd [#allocation3], 4294966272  ;;  %v43_v0 = vld [vmem:[%s520_s1 + $0x18] sm:$0xff]  ;;  %v42_v1 = vld [vmem:[%s520_s1 + $0x10] sm:$0xff]  ;;  %vm48_vm0 = vcmask 261120   ;;  %vm80_vm1 = vcmask 31744   ;;  %v78_v38 = vlaneseq }
   0x7   :  { %375 = vmatpush.msra.mxu2 %v43_v0  ;;  %v39_v2 = vld [vmem:[%s519_s0 + $0x8] sm:$0xff]  ;;  %67 = vmatpush.msra.mxu0 %v43_v0  ;;  %v38_v3 = vld [vmem:[%s519_s0] sm:$0xff]  ;;  %v346_v15 = vld [vmem:[#allocation2 + $0x30] sm:$0xf0]  ;;  %vm274_vm4 = vcmask 1043456   ;;  %s311_s15 = sshll.u32 %s524_s5, 4  ;;  %s312_s15 = int_to_ptr.hbm [resolvable:$true] %s311_s15 }
   0x8   :  { %v41_v4 = vld [vmem:[%s520_s1 + $0x8] sm:$0xff]  ;;  %v121_v5 = vpack.c.bf16 %v39_v2, %v38_v3  ;;  %v40_v6 = vld [vmem:[%s520_s1] sm:$0xff]  ;;  %v374_v18 = vld [vmem:[#allocation2 + $0x34] sm:$0xf0]  ;;  %v79_v39 = vand.u32 127, %v78_v38  ;;  %s445_s16 = smov 128  }
   0x9   :  { %376 = vmatpush.msra.mxu2 %v42_v1  ;;  %68 = vmatpush.msra.mxu0 %v42_v1  ;;  %v387_v7 = vld [vmem:[%s521_s2] ss:$0 sm:$0xff]  ;;  %v371_v14 = vld [vmem:[#allocation2 + $0x24] sm:$0xf]  ;;  %v352_v16 = vld [vmem:[#allocation2 + $0x28] sm:$0xf] }
   0xa   :  { %v349_v17 = vor.u32 %v371_v14, %v346_v15  ;;  %v367_v19 = vld [vmem:[#allocation2 + $0x4] sm:$0xf]  ;;  %v330_v20 = vld [vmem:[#allocation2 + $0x10] sm:$0xf0]  ;;  %v353_v21 = vor.u32 %v374_v18, %v352_v16  ;;  %v344_v22 = vld [vmem:[#allocation2 + $0x20] sm:$0xf] }
   0xb   :  { %377 = vmatpush.msra.mxu2 %v41_v4  ;;  %69 = vmatpush.msra.mxu0 %v41_v4  ;;  %v373_v23 = vld [vmem:[#allocation2 + $0x2c] sm:$0xf0]  ;;  %v336_v24 = vld [vmem:[#allocation2 + $0x8] sm:$0xf]  ;;  %v333_v25 = vor.u32 %v367_v19, %v330_v20  ;;  %v370_v27 = vld [vmem:[#allocation2 + $0x14] sm:$0xf0] }
   0xc   :  { %v345_v26 = vor.u32 %v373_v23, %v344_v22  ;;  %v372_v28 = vld [vmem:[#allocation2 + $0x2c] sm:$0xf]  ;;  %v354_v29 = vld [vmem:[#allocation2 + $0x38] sm:$0xf0]  ;;  %207 = vmatpush.bf16.msra.mxu3 %v353_v21  ;;  %v337_v30 = vor.u32 %v370_v27, %v336_v24  ;;  %v328_v32 = vld [vmem:[#allocation2] sm:$0xf] }
   0xd   :  { %378 = vmatpush.msra.mxu2 %v40_v6  ;;  %70 = vmatpush.msra.mxu0 %v40_v6  ;;  %v357_v31 = vor.u32 %v372_v28, %v354_v29  ;;  %v369_v33 = vld [vmem:[#allocation2 + $0xc] sm:$0xf0]  ;;  %v368_v34 = vld [vmem:[#allocation2 + $0xc] sm:$0xf]  ;;  %v338_v36 = vld [vmem:[#allocation2 + $0x18] sm:$0xf0] }
   0xe   :  { %325 = vmatmul.msk.f32.vlgmr.msra.gmra.mxu2 %vm48_vm0, %v39_v2  ;;  %324 = vmatmul.msk.f32.vlgmr.msra.gmra.mxu0 %vm48_vm0, %v38_v3  ;;  %v329_v35 = vor.u32 %v369_v33, %v328_v32  ;;  %v341_v37 = vor.u32 %v368_v34, %v338_v36  ;;  %v267_v50 = vld [vmem:[%s523_s4] sm:$0xf]  ;;  %v443_v1 = vmov 0.0   ;;  %s444_s4 = smov [#allocation5]   ;;  %s446_s17 = smov 8  }
   0xf   :  { %193 = vmatpush.bf16.msrb.mxu2 %v349_v17  ;;  %179 = vmatpush.bf16.msra.mxu1 %v345_v26  ;;  %s309_s12 = sshll.u32 %s444_s4, 4  ;;  %s310_s12 = int_to_ptr.vmem [resolvable:$true] %s309_s12 }
  0x10   :  { %221 = vmatpush.bf16.msrb.mxu0 %v357_v31  ;;  %208 = vmatpush.bf16.msra.mxu3 %v337_v30 }
  0x13   :  { %194 = vmatpush.bf16.msrb.mxu2 %v333_v25  ;;  %180 = vmatpush.bf16.msra.mxu1 %v329_v35 }
  0x14   :  { %222 = vmatpush.bf16.msrb.mxu0 %v341_v37  ;;  %360 = vmatmul.msk.bf16.vlgmr.msra.gmra.mxu3 %vm48_vm0, %v121_v5 }
  0x15   :  { %379 = vmatpush.msk.msrb.mxu3 %vm274_vm4, %v267_v50 }
  0x16   :  { %359 = vmatmul.msk.bf16.vlgmr.msrb.gmra.mxu2 %vm48_vm0, %v121_v5  ;;  %358 = vmatmul.msk.bf16.vlgmr.msra.gmra.mxu1 %vm48_vm0, %v121_v5 }
  0x17   :  { %361 = vmatmul.msk.bf16.vlgmr.msrb.gmra.mxu0 %vm48_vm0, %v121_v5  ;;  %364 = vmatpush.msk.msrb.mxu1 %vm274_vm4, %v267_v50 }
  0x8b   :  { %v72_v10 = vpop.f32.mrf.mxu0 }
  0x8c   :  { %v73_v12 = vadd.f32 %v387_v7, %v72_v10 }
  0x8e   :  { %v81_v13 = vsel %vm80_vm1, %v73_v12, -inf }
  0x91   :  { %v75_v8 = vpop.f32.mrf.mxu2 }
  0x92   :  { %v76_v9 = vadd.f32 %v387_v7, %v75_v8 }
  0x93   :  { %v182_v8 = vpop.f32.mrf.mxu1 }
  0x94   :  { %v84_v11 = vsel %vm80_vm1, %v76_v9, -inf }
  0x95   :  { %85 = vmax.xlane.f32.xlu0 %v84_v11  ;;  %v224_v11 = vpop.f32.mrf.mxu0 }
  0x97   :  { %v210_v10 = vpop.f32.mrf.mxu3 }
  0x9d   :  { %82 = vmax.xlane.f32.xlu0 %v81_v13  ;;  %v226_v20 = vpop.f32.mrf.mxu0 }
  0x9f   :  { %v212_v15 = vpop.f32.mrf.mxu3 }
 0x108   :  { %v86_v40 = vpop.xlane.xlu0 %85 }
 0x109   :  { %vm88_vm2 = vcmp.ge.f32.partialorder %v76_v9, %v86_v40  ;;  %v196_v9 = vpop.f32.mrf.mxu2 }
 0x10a   :  { %v90_v41 = vsel %vm88_vm2, %v79_v39, 4 }
 0x10b   :  { %v106_v42 = vsel %vm80_vm1, %v90_v41, 2147483647 }
 0x10c   :  { %v108_v43 = vshra.s32 %v106_v42, 16  ;;  %v107_v51 = vand.u32 65535, %v106_v42 }
 0x10e   :  { %v110_v44 = vcvt.s32.f32 %v108_v43  ;;  %v109_v53 = vcvt.s32.f32 %v107_v51 }
 0x110   :  { %111 = vmin.xlane.f32.xlu1 %v110_v44  ;;  %v83_v45 = vpop.xlane.xlu0 %82 }
 0x111   :  { %vm87_vm3 = vcmp.ge.f32.partialorder %v73_v12, %v83_v45  ;;  %v184_v12 = vpop.f32.mrf.mxu1  ;;  %v198_v14 = vpop.f32.mrf.mxu2 }
 0x112   :  { %v89_v46 = vsel %vm87_vm3, %v79_v39, 4 }
 0x113   :  { %v91_v47 = vsel %vm80_vm1, %v89_v46, 2147483647 }
 0x114   :  { %v93_v48 = vshra.s32 %v91_v47, 16  ;;  %v92_v55 = vand.u32 65535, %v91_v47 }
 0x116   :  { %v95_v49 = vcvt.s32.f32 %v93_v48  ;;  %v94_v57 = vcvt.s32.f32 %v92_v55 }
 0x118   :  { %96 = vmin.xlane.f32.xlu1 %v95_v49 }
 0x183   :  { %v112_v52 = vpop.xlane.xlu1 %111 }
 0x184   :  { %vm113_vm5 = vcmp.eq.f32.partialorder %v110_v44, %v112_v52  ;;  %v118_v59 = vcvt.f32.s32 %v112_v52 }
 0x185   :  { %v114_v54 = vsel %vm113_vm5, %v109_v53, inf }
 0x186   :  { %115 = vmin.xlane.f32.xlu2 %v114_v54  ;;  %v119_v61 = vshll.u32 %v118_v59, 16 }
 0x18b   :  { %v97_v56 = vpop.xlane.xlu1 %96 }
 0x18c   :  { %vm98_vm6 = vcmp.eq.f32.partialorder %v95_v49, %v97_v56  ;;  %v103_v0 = vcvt.f32.s32 %v97_v56 }
 0x18d   :  { %v99_v58 = vsel %vm98_vm6, %v94_v57, inf }
 0x18e   :  { %100 = vmin.xlane.f32.xlu2 %v99_v58  ;;  %v104_v4 = vshll.u32 %v103_v0, 16 }
 0x1f9   :  { %v116_v60 = vpop.xlane.xlu2 %115 }
 0x1fa   :  { %v117_v62 = vcvt.f32.s32 %v116_v60 }
 0x1fc   :  { %v120_v63 = vadd.s32 %v119_v61, %v117_v62 }
 0x1fe   :  { %vm262_vm7 = vcmp.eq.s32.totalorder %v120_v63, %v79_v39  ;;  %vm230_vm9 = vcmp.eq.s32.totalorder %v120_v63, 0  ;;  %vm238_vm11 = vcmp.eq.s32.totalorder %v120_v63, 1  ;;  %vm246_vm13 = vcmp.eq.s32.totalorder %v120_v63, 2 }
 0x1ff   :  { %v363_v2 = vsel %vm262_vm7, 1.0, %v443_v1  ;;  %v236_v13 = vsel %vm230_vm9, %v184_v12, 0.0  ;;  %vm254_vm15 = vcmp.eq.s32.totalorder %v120_v63, 3 }
 0x200   :  { %366 = vmatmul.msk.f32.vlgmr.msrb.gmra.mxu3 %vm80_vm1, %v363_v2  ;;  %v244_v17 = vsel %vm238_vm11, %v198_v14, %v236_v13 }
 0x201   :  { %v101_v3 = vpop.xlane.xlu2 %100  ;;  %v252_v19 = vsel %vm246_vm13, %v212_v15, %v244_v17 }
 0x202   :  { %v102_v5 = vcvt.f32.s32 %v101_v3  ;;  %v260_v22 = vsel %vm254_vm15, %v226_v20, %v252_v19 }
 0x204   :  { %v105_v6 = vadd.s32 %v104_v4, %v102_v5 }
 0x206   :  { %vm261_vm8 = vcmp.eq.s32.totalorder %v105_v6, %v79_v39  ;;  %vm229_vm10 = vcmp.eq.s32.totalorder %v105_v6, 0  ;;  %vm237_vm12 = vcmp.eq.s32.totalorder %v105_v6, 1  ;;  %vm245_vm14 = vcmp.eq.s32.totalorder %v105_v6, 2 }
 0x207   :  { %v362_v7 = vsel %vm261_vm8, 1.0, %v443_v1  ;;  %v235_v16 = vsel %vm229_vm10, %v182_v8, 0.0  ;;  %vm253_vm0 = vcmp.eq.s32.totalorder %v105_v6, 3 }
 0x208   :  { %365 = vmatmul.msk.f32.vlgmr.msrb.gmra.mxu1 %vm80_vm1, %v362_v7  ;;  %v243_v18 = vsel %vm237_vm12, %v196_v9, %v235_v16 }
 0x209   :  { %v251_v21 = vsel %vm245_vm14, %v210_v10, %v243_v18 }
 0x20a   :  { %v259_v25 = vsel %vm253_vm0, %v224_v11, %v251_v21 }
 0x283   :  { %v298_v23 = vpop.f32.mrf.mxu3 }
 0x284   :  { %v302_v24 = vadd.f32 %v298_v23, %v260_v22 }
 0x285   :  { %v295_v26 = vpop.f32.mrf.mxu1 }
 0x286   :  { %304 = vst [vmem:[#allocation5 + $0x8] sm:$0xff] %v302_v24  ;;  %v301_v27 = vadd.f32 %v295_v26, %v259_v25 }
 0x288   :  { %303 = vst [vmem:[#allocation5] sm:$0xff] %v301_v27 }
 0x289   :  { %317 = dma.vmem_to_hbm [thread:$0]  %s310_s12, 256, %s312_s15, [#allocation4], %s445_s16, %s445_s16, %s446_s17  }
 0x28a   :  { %438 = dma.done.wait [#allocation4], 256  }
 0x28b   :  { %439 = vsyncadd [#allocation4], 4294967040 }
 0x28c   :  { %322 = vsyncpa [#allocation3], 1 }
 0x28d   :  { %323 = vsyncpa [#allocation4], 1 }

// kernel: tpu_custom_call.1
= control target key start
LH: loop header
LB: loop body
LE: loop exit
PB: predicated region body
PF: predicated region fallthrough
CT: control target
= control target key end

     0   :  { %10 = vsyncpa [#allocation3], 0  ;;  %s519_s0 = inlined_call_operand.vmem [shape: f32[16,32], index: 0, kind: input, shape index: {}]   ;;  %s520_s1 = inlined_call_operand.vmem [shape: f32[32,4], index: 1, kind: input, shape index: {}]   ;;  %s521_s2 = inlined_call_operand.vmem [shape: f32[1,4], index: 2, kind: input, shape index: {}]   ;;  %s522_s3 = inlined_call_operand.hbm [shape: bf16[32,512], index: 3, kind: input, shape index: {}]   ;;  %s523_s4 = inlined_call_operand.vmem [shape: f32[4,128], index: 4, kind: input, shape index: {}]   ;;  %s524_s5 = inlined_call_operand.hbm [shape: f32[16,128], index: 5, kind: output, shape index: {}]  }
   0x1   :  { %11 = vsyncpa [#allocation4], 0  ;;  %s22_s20 = sshll.u32 %s522_s3, 4  ;;  %s440_s21 = smov [#allocation2]   ;;  %s23_s20 = int_to_ptr.hbm [resolvable:$true] %s22_s20 }
   0x2   :  { %s24_s22 = sshll.u32 %s440_s21, 4  ;;  %s441_s23 = smov 256   ;;  %s25_s22 = int_to_ptr.vmem [resolvable:$true] %s24_s22 }
   0x3   :  { %s442_s24 = smov 16  }
   0x4   :  { %30 = dma.hbm_to_vmem [thread:$0]  %s23_s20, 1024, %s25_s22, [#allocation3], %s441_s23, %s441_s23, %s442_s24  }
   0x5   :  { %436 = dma.done.wait [#allocation3], 1024  }
   0x6   :  { %437 = vsyncadd [#allocation3], 4294966272  ;;  %v43_v0 = vld [vmem:[%s520_s1 + $0x18] sm:$0xff]  ;;  %v42_v1 = vld [vmem:[%s520_s1 + $0x10] sm:$0xff]  ;;  %vm48_vm0 = vcmask 261120   ;;  %vm80_vm1 = vcmask 31744   ;;  %v78_v38 = vlaneseq }
   0x7   :  { %375 = vmatpush.msra.mxu2 %v43_v0  ;;  %v39_v2 = vld [vmem:[%s519_s0 + $0x8] sm:$0xff]  ;;  %67 = vmatpush.msra.mxu0 %v43_v0  ;;  %v38_v3 = vld [vmem:[%s519_s0] sm:$0xff]  ;;  %v346_v15 = vld [vmem:[#allocation2 + $0x30] sm:$0xf0]  ;;  %vm274_vm4 = vcmask 1043456   ;;  %s311_s15 = sshll.u32 %s524_s5, 4  ;;  %s312_s15 = int_to_ptr.hbm [resolvable:$true] %s311_s15 }
   0x8   :  { %v41_v4 = vld [vmem:[%s520_s1 + $0x8] sm:$0xff]  ;;  %v121_v5 = vpack.c.bf16 %v39_v2, %v38_v3  ;;  %v40_v6 = vld [vmem:[%s520_s1] sm:$0xff]  ;;  %v374_v18 = vld [vmem:[#allocation2 + $0x34] sm:$0xf0]  ;;  %v79_v39 = vand.u32 127, %v78_v38  ;;  %s445_s16 = smov 128  }
   0x9   :  { %376 = vmatpush.msra.mxu2 %v42_v1  ;;  %68 = vmatpush.msra.mxu0 %v42_v1  ;;  %v387_v7 = vld [vmem:[%s521_s2] ss:$0 sm:$0xff]  ;;  %v371_v14 = vld [vmem:[#allocation2 + $0x24] sm:$0xf]  ;;  %v352_v16 = vld [vmem:[#allocation2 + $0x28] sm:$0xf] }
   0xa   :  { %v349_v17 = vor.u32 %v371_v14, %v346_v15  ;;  %v367_v19 = vld [vmem:[#allocation2 + $0x4] sm:$0xf]  ;;  %v330_v20 = vld [vmem:[#allocation2 + $0x10] sm:$0xf0]  ;;  %v353_v21 = vor.u32 %v374_v18, %v352_v16  ;;  %v344_v22 = vld [vmem:[#allocation2 + $0x20] sm:$0xf] }
   0xb   :  { %377 = vmatpush.msra.mxu2 %v41_v4  ;;  %69 = vmatpush.msra.mxu0 %v41_v4  ;;  %v373_v23 = vld [vmem:[#allocation2 + $0x2c] sm:$0xf0]  ;;  %v336_v24 = vld [vmem:[#allocation2 + $0x8] sm:$0xf]  ;;  %v333_v25 = vor.u32 %v367_v19, %v330_v20  ;;  %v370_v27 = vld [vmem:[#allocation2 + $0x14] sm:$0xf0] }
   0xc   :  { %v345_v26 = vor.u32 %v373_v23, %v344_v22  ;;  %v372_v28 = vld [vmem:[#allocation2 + $0x2c] sm:$0xf]  ;;  %v354_v29 = vld [vmem:[#allocation2 + $0x38] sm:$0xf0]  ;;  %207 = vmatpush.bf16.msra.mxu3 %v353_v21  ;;  %v337_v30 = vor.u32 %v370_v27, %v336_v24  ;;  %v328_v32 = vld [vmem:[#allocation2] sm:$0xf] }
   0xd   :  { %378 = vmatpush.msra.mxu2 %v40_v6  ;;  %70 = vmatpush.msra.mxu0 %v40_v6  ;;  %v357_v31 = vor.u32 %v372_v28, %v354_v29  ;;  %v369_v33 = vld [vmem:[#allocation2 + $0xc] sm:$0xf0]  ;;  %v368_v34 = vld [vmem:[#allocation2 + $0xc] sm:$0xf]  ;;  %v338_v36 = vld [vmem:[#allocation2 + $0x18] sm:$0xf0] }
   0xe   :  { %325 = vmatmul.msk.f32.vlgmr.msra.gmra.mxu2 %vm48_vm0, %v39_v2  ;;  %324 = vmatmul.msk.f32.vlgmr.msra.gmra.mxu0 %vm48_vm0, %v38_v3  ;;  %v329_v35 = vor.u32 %v369_v33, %v328_v32  ;;  %v341_v37 = vor.u32 %v368_v34, %v338_v36  ;;  %v267_v50 = vld [vmem:[%s523_s4] sm:$0xf]  ;;  %v443_v1 = vmov 0.0   ;;  %s444_s4 = smov [#allocation5]   ;;  %s446_s17 = smov 8  }
   0xf   :  { %193 = vmatpush.bf16.msrb.mxu2 %v349_v17  ;;  %179 = vmatpush.bf16.msra.mxu1 %v345_v26  ;;  %s309_s12 = sshll.u32 %s444_s4, 4  ;;  %s310_s12 = int_to_ptr.vmem [resolvable:$true] %s309_s12 }
  0x10   :  { %221 = vmatpush.bf16.msrb.mxu0 %v357_v31  ;;  %208 = vmatpush.bf16.msra.mxu3 %v337_v30 }
  0x13   :  { %194 = vmatpush.bf16.msrb.mxu2 %v333_v25  ;;  %180 = vmatpush.bf16.msra.mxu1 %v329_v35 }
  0x14   :  { %222 = vmatpush.bf16.msrb.mxu0 %v341_v37  ;;  %360 = vmatmul.msk.bf16.vlgmr.msra.gmra.mxu3 %vm48_vm0, %v121_v5 }
  0x15   :  { %379 = vmatpush.msk.msrb.mxu3 %vm274_vm4, %v267_v50 }
  0x16   :  { %359 = vmatmul.msk.bf16.vlgmr.msrb.gmra.mxu2 %vm48_vm0, %v121_v5  ;;  %358 = vmatmul.msk.bf16.vlgmr.msra.gmra.mxu1 %vm48_vm0, %v121_v5 }
  0x17   :  { %361 = vmatmul.msk.bf16.vlgmr.msrb.gmra.mxu0 %vm48_vm0, %v121_v5  ;;  %364 = vmatpush.msk.msrb.mxu1 %vm274_vm4, %v267_v50 }
  0x8b   :  { %v72_v10 = vpop.f32.mrf.mxu0 }
  0x8c   :  { %v73_v12 = vadd.f32 %v387_v7, %v72_v10 }
  0x8e   :  { %v81_v13 = vsel %vm80_vm1, %v73_v12, -inf }
  0x91   :  { %v75_v8 = vpop.f32.mrf.mxu2 }
  0x92   :  { %v76_v9 = vadd.f32 %v387_v7, %v75_v8 }
  0x93   :  { %v182_v8 = vpop.f32.mrf.mxu1 }
  0x94   :  { %v84_v11 = vsel %vm80_vm1, %v76_v9, -inf }
  0x95   :  { %85 = vmax.xlane.f32.xlu0 %v84_v11  ;;  %v224_v11 = vpop.f32.mrf.mxu0 }
  0x97   :  { %v210_v10 = vpop.f32.mrf.mxu3 }
  0x9d   :  { %82 = vmax.xlane.f32.xlu0 %v81_v13  ;;  %v226_v20 = vpop.f32.mrf.mxu0 }
  0x9f   :  { %v212_v15 = vpop.f32.mrf.mxu3 }
 0x108   :  { %v86_v40 = vpop.xlane.xlu0 %85 }
 0x109   :  { %vm88_vm2 = vcmp.ge.f32.partialorder %v76_v9, %v86_v40  ;;  %v196_v9 = vpop.f32.mrf.mxu2 }
 0x10a   :  { %v90_v41 = vsel %vm88_vm2, %v79_v39, 4 }
 0x10b   :  { %v106_v42 = vsel %vm80_vm1, %v90_v41, 2147483647 }
 0x10c   :  { %v108_v43 = vshra.s32 %v106_v42, 16  ;;  %v107_v51 = vand.u32 65535, %v106_v42 }
 0x10e   :  { %v110_v44 = vcvt.s32.f32 %v108_v43  ;;  %v109_v53 = vcvt.s32.f32 %v107_v51 }
 0x110   :  { %111 = vmin.xlane.f32.xlu1 %v110_v44  ;;  %v83_v45 = vpop.xlane.xlu0 %82 }
 0x111   :  { %vm87_vm3 = vcmp.ge.f32.partialorder %v73_v12, %v83_v45  ;;  %v184_v12 = vpop.f32.mrf.mxu1  ;;  %v198_v14 = vpop.f32.mrf.mxu2 }
 0x112   :  { %v89_v46 = vsel %vm87_vm3, %v79_v39, 4 }
 0x113   :  { %v91_v47 = vsel %vm80_vm1, %v89_v46, 2147483647 }
 0x114   :  { %v93_v48 = vshra.s32 %v91_v47, 16  ;;  %v92_v55 = vand.u32 65535, %v91_v47 }
 0x116   :  { %v95_v49 = vcvt.s32.f32 %v93_v48  ;;  %v94_v57 = vcvt.s32.f32 %v92_v55 }
 0x118   :  { %96 = vmin.xlane.f32.xlu1 %v95_v49 }
 0x183   :  { %v112_v52 = vpop.xlane.xlu1 %111 }
 0x184   :  { %vm113_vm5 = vcmp.eq.f32.partialorder %v110_v44, %v112_v52  ;;  %v118_v59 = vcvt.f32.s32 %v112_v52 }
 0x185   :  { %v114_v54 = vsel %vm113_vm5, %v109_v53, inf }
 0x186   :  { %115 = vmin.xlane.f32.xlu2 %v114_v54  ;;  %v119_v61 = vshll.u32 %v118_v59, 16 }
 0x18b   :  { %v97_v56 = vpop.xlane.xlu1 %96 }
 0x18c   :  { %vm98_vm6 = vcmp.eq.f32.partialorder %v95_v49, %v97_v56  ;;  %v103_v0 = vcvt.f32.s32 %v97_v56 }
 0x18d   :  { %v99_v58 = vsel %vm98_vm6, %v94_v57, inf }
 0x18e   :  { %100 = vmin.xlane.f32.xlu2 %v99_v58  ;;  %v104_v4 = vshll.u32 %v103_v0, 16 }
 0x1f9   :  { %v116_v60 = vpop.xlane.xlu2 %115 }
 0x1fa   :  { %v117_v62 = vcvt.f32.s32 %v116_v60 }
 0x1fc   :  { %v120_v63 = vadd.s32 %v119_v61, %v117_v62 }
 0x1fe   :  { %vm262_vm7 = vcmp.eq.s32.totalorder %v120_v63, %v79_v39  ;;  %vm230_vm9 = vcmp.eq.s32.totalorder %v120_v63, 0  ;;  %vm238_vm11 = vcmp.eq.s32.totalorder %v120_v63, 1  ;;  %vm246_vm13 = vcmp.eq.s32.totalorder %v120_v63, 2 }
 0x1ff   :  { %v363_v2 = vsel %vm262_vm7, 1.0, %v443_v1  ;;  %v236_v13 = vsel %vm230_vm9, %v184_v12, 0.0  ;;  %vm254_vm15 = vcmp.eq.s32.totalorder %v120_v63, 3 }
 0x200   :  { %366 = vmatmul.msk.f32.vlgmr.msrb.gmra.mxu3 %vm80_vm1, %v363_v2  ;;  %v244_v17 = vsel %vm238_vm11, %v198_v14, %v236_v13 }
 0x201   :  { %v101_v3 = vpop.xlane.xlu2 %100  ;;  %v252_v19 = vsel %vm246_vm13, %v212_v15, %v244_v17 }
 0x202   :  { %v102_v5 = vcvt.f32.s32 %v101_v3  ;;  %v260_v22 = vsel %vm254_vm15, %v226_v20, %v252_v19 }
 0x204   :  { %v105_v6 = vadd.s32 %v104_v4, %v102_v5 }
 0x206   :  { %vm261_vm8 = vcmp.eq.s32.totalorder %v105_v6, %v79_v39  ;;  %vm229_vm10 = vcmp.eq.s32.totalorder %v105_v6, 0  ;;  %vm237_vm12 = vcmp.eq.s32.totalorder %v105_v6, 1  ;;  %vm245_vm14 = vcmp.eq.s32.totalorder %v105_v6, 2 }
 0x207   :  { %v362_v7 = vsel %vm261_vm8, 1.0, %v443_v1  ;;  %v235_v16 = vsel %vm229_vm10, %v182_v8, 0.0  ;;  %vm253_vm0 = vcmp.eq.s32.totalorder %v105_v6, 3 }
 0x208   :  { %365 = vmatmul.msk.f32.vlgmr.msrb.gmra.mxu1 %vm80_vm1, %v362_v7  ;;  %v243_v18 = vsel %vm237_vm12, %v196_v9, %v235_v16 }
 0x209   :  { %v251_v21 = vsel %vm245_vm14, %v210_v10, %v243_v18 }
 0x20a   :  { %v259_v25 = vsel %vm253_vm0, %v224_v11, %v251_v21 }
 0x283   :  { %v298_v23 = vpop.f32.mrf.mxu3 }
 0x284   :  { %v302_v24 = vadd.f32 %v298_v23, %v260_v22 }
 0x285   :  { %v295_v26 = vpop.f32.mrf.mxu1 }
 0x286   :  { %304 = vst [vmem:[#allocation5 + $0x8] sm:$0xff] %v302_v24  ;;  %v301_v27 = vadd.f32 %v295_v26, %v259_v25 }
 0x288   :  { %303 = vst [vmem:[#allocation5] sm:$0xff] %v301_v27 }
 0x289   :  { %317 = dma.vmem_to_hbm [thread:$0]  %s310_s12, 256, %s312_s15, [#allocation4], %s445_s16, %s445_s16, %s446_s17  }
 0x28a   :  { %438 = dma.done.wait [#allocation4], 256  }
 0x28b   :  { %439 = vsyncadd [#allocation4], 4294967040 }
 0x28c   :  { %322 = vsyncpa [#allocation3], 1 }
 0x28d   :  { %323 = vsyncpa [#allocation4], 1 }

</bundles_post_ra>
